<compile_context>
chip_gen: v5e
topology: v5e:2x2
jax: 0.10.0
libtpu: 0.0.40
codegen_flags: <defaults>
</compile_context>

<pallas_src>
import jax
import jax.numpy as jnp
from jax.experimental import pallas as pl
from jax.experimental.pallas import tpu as pltpu


# ----------------------------------------------------------------------------
# Packed-parameter layout: per layer, row-major (out, in) weights then bias.
# ----------------------------------------------------------------------------
_LAYER_DIMS = [(4, 4), (4, 4), (4, 4), (4, 1)]   # (in_features, out_features)
_W_OFF, _B_OFF = [], []
_off = 0
for _fi, _fo in _LAYER_DIMS:
    _W_OFF.append(_off); _off += _fi * _fo
    _B_OFF.append(_off); _off += _fo
_N_PARAMS = _off                                  # 65 floats total


def _round_up(a, m):
    return ((a + m - 1) // m) * m


def pack_params(params):
    """Pack all weights/biases into one (65,) f32 buffer, folding the sigmoid
    affine into the parameters.

    With sigmoid(z) = 0.5*(tanh(0.5*z)+1) and t_l = tanh(0.5*z_l):
      layer 1     : acc = (0.5*W1) x    + 0.5*b1                      -> tanh
      layers 2..L : acc = (0.25*Wl) t_{l-1} + (0.25*Wl@1 + 0.5*bl)    -> tanh
    Only the final layer applies 0.5*(t+1) to recover sigmoid(z_L).
    The 0.5/0.25 scales are exact in fp32 (powers of two)."""
    flat = []
    n_layers = len(_LAYER_DIMS)
    for i in range(1, n_layers + 1):
        w = jnp.asarray(params[f"w{i}"], jnp.float32)   # (out, in), row-major
        b = jnp.asarray(params[f"b{i}"], jnp.float32)   # (out,)
        if i == 1:
            wf = 0.5 * w
            bf = 0.5 * b
        else:
            wf = 0.25 * w
            bf = 0.25 * jnp.sum(w, axis=1) + 0.5 * b
        flat.append(wf.reshape(-1))
        flat.append(bf.reshape(-1))
    return jnp.concatenate(flat)                        # (65,) f32


def _mlp_kernel(p_ref, x_ref, o_ref):
    """p_ref: (65,) f32 in SMEM  (folded params, see pack_params).
       x_ref: (4, rb, 128) f32 in VMEM  (feature, batch-rows, batch-lanes).
       o_ref: (1, rb, 128) f32 in VMEM.
    """
    n_layers = len(_LAYER_DIMS)
    # Load the 4 input-feature slabs once; each is a dense (rb, 128) tile.
    h = [x_ref[k] for k in range(_LAYER_DIMS[0][0])]

    # Fully unrolled 4-layer MLP: scalar-broadcast FMAs (VPU) + one tanh per
    # activation (EUP).  Thanks to the parameter folding, acc == 0.5*z.
    for layer, (n_in, n_out) in enumerate(_LAYER_DIMS):
        w_off = _W_OFF[layer]
        b_off = _B_OFF[layer]
        last = layer == n_layers - 1
        new_h = []
        for o in range(n_out):
            acc = h[0] * p_ref[w_off + o * n_in]
            for k in range(1, n_in):
                acc = acc + h[k] * p_ref[w_off + o * n_in + k]
            acc = acc + p_ref[b_off + o]
            t = jnp.tanh(acc)
            new_h.append(0.5 * (t + 1.0) if last else t)
        h = new_h

    o_ref[0] = h[0].astype(o_ref.dtype)           # unmasked lane-dense store


def network_forward(x, params, *, block_rows=1024):
    """x: (B, 4) float32 (PyTorch Linear layout). Returns (B, 1) float32."""
    B = x.shape[0]
    p = pack_params(params)
    x = x.astype(jnp.float32)

    # Batch-on-lanes layout: (B,4) -> pad -> (Bp,4) -> (4,Bp) -> (4,Rp,128).
    rows = -(-B // 128)                           # ceil(B / 128)
    rb = min(_round_up(block_rows, 8), _round_up(rows, 8))
    if rows >= 16:                                # enough work: force >= 2 grid
        rb = min(rb, _round_up(-(-rows // 2), 8))  # steps so both v7x TCs run
    Rp = _round_up(rows, rb)
    Bp = Rp * 128

    if Bp != B:
        x = jnp.pad(x, ((0, Bp - B), (0, 0)))     # pad BEFORE transpose: pad +
    xt = x.T.reshape(4, Rp, 128)                  # transpose fuse; reshape free

    grid = (Rp // rb,)

    out = pl.pallas_call(
        _mlp_kernel,
        out_shape=jax.ShapeDtypeStruct((1, Rp, 128), jnp.float32),
        grid_spec=pltpu.PrefetchScalarGridSpec(
            num_scalar_prefetch=0,
            grid=grid,
            in_specs=[
                # All weights/biases: one tiny buffer, resident in SMEM.
                pl.BlockSpec(memory_space=pltpu.MemorySpace.SMEM),
                # Activations: batch-tiled, double-buffered by Pallas.
                pl.BlockSpec((4, rb, 128), lambda i: (0, i, 0)),
            ],
            out_specs=pl.BlockSpec((1, rb, 128), lambda i: (0, i, 0)),
        ),
        compiler_params=pltpu.CompilerParams(
            dimension_semantics=("parallel",),     # megacore / 2 TCs on v7x
            allow_input_fusion=[False, True],      # fuse pad+transpose into DMA
        ),
    )(p, xt)

    return out.reshape(Bp)[:B].reshape(B, 1)


def init_params(key):
    """Mimics nn.Linear init: U(-1/sqrt(fan_in), 1/sqrt(fan_in)).
    Weights stored in PyTorch-native (out_features, in_features) shape."""
    params = {}
    for i, (fan_in, fan_out) in enumerate(_LAYER_DIMS, start=1):
        key, kw, kb = jax.random.split(key, 3)
        bound = 1.0 / float(fan_in) ** 0.5
        params[f"w{i}"] = jax.random.uniform(
            kw, (fan_out, fan_in), jnp.float32, minval=-bound, maxval=bound)
        params[f"b{i}"] = jax.random.uniform(
            kb, (fan_out,), jnp.float32, minval=-bound, maxval=bound)
    return params


def _reference_forward(x, params):
    h = x
    for i in range(1, len(_LAYER_DIMS) + 1):
        h = jax.nn.sigmoid(h @ params[f"w{i}"].T + params[f"b{i}"])
    return h


if __name__ == "__main__":
    key = jax.random.PRNGKey(0)
    key, kp = jax.random.split(key)
    params = init_params(kp)

    # Dense multi-step grids (2048 -> grid 2, 4096 -> grid 2 with rb=16) and a
    # tiny ragged batch (padding path).
    for B in (2048, 4096, 5):
        key, kx = jax.random.split(key)
        x = jax.random.normal(kx, (B, 4), jnp.float32)

        out = jax.block_until_ready(network_forward(x, params))
        ref = _reference_forward(x, params)

        assert out.shape == (B, 1), out.shape
        assert jnp.allclose(out, ref, atol=1e-5, rtol=1e-5), (
            float(jnp.max(jnp.abs(out - ref))))

    print("KERNEL_OK")
</pallas_src>

<mosaic_0001>
module attributes {stable_mosaic.version = 11 : i64} {
  func.func @_mlp_kernel(%arg0: i32, %arg1: memref<65xf32, #tpu.memory_space<smem>>, %arg2: memref<4x8x128xf32, #tpu.memory_space<vmem>>, %arg3: memref<1x8x128xf32, #tpu.memory_space<vmem>>) attributes {dimension_semantics = [#tpu.dimension_semantics<parallel>], iteration_bounds = array<i64: 2>, scalar_prefetch = 0 : i64, scratch_operands = 0 : i64, tpu.core_type = #tpu.core_type<tc>, window_params = [{transform_indices = @transform_0, window_bounds = array<i64: 65>}, {transform_indices = @transform_1, window_bounds = array<i64: 4, 8, 128>}, {transform_indices = @transform_2, window_bounds = array<i64: 1, 8, 128>}]} {
    %c0 = arith.constant 0 : index
    %c0_0 = arith.constant 0 : index
    %c0_1 = arith.constant 0 : index
    %0 = vector.load %arg2[%c0, %c0_0, %c0_1] : memref<4x8x128xf32, #tpu.memory_space<vmem>>, vector<1x8x128xf32>
    %1 = vector.shape_cast %0 : vector<1x8x128xf32> to vector<8x128xf32>
    %c1 = arith.constant 1 : index
    %c0_2 = arith.constant 0 : index
    %c0_3 = arith.constant 0 : index
    %2 = vector.load %arg2[%c1, %c0_2, %c0_3] : memref<4x8x128xf32, #tpu.memory_space<vmem>>, vector<1x8x128xf32>
    %3 = vector.shape_cast %2 : vector<1x8x128xf32> to vector<8x128xf32>
    %c2 = arith.constant 2 : index
    %c0_4 = arith.constant 0 : index
    %c0_5 = arith.constant 0 : index
    %4 = vector.load %arg2[%c2, %c0_4, %c0_5] : memref<4x8x128xf32, #tpu.memory_space<vmem>>, vector<1x8x128xf32>
    %5 = vector.shape_cast %4 : vector<1x8x128xf32> to vector<8x128xf32>
    %c3 = arith.constant 3 : index
    %c0_6 = arith.constant 0 : index
    %c0_7 = arith.constant 0 : index
    %6 = vector.load %arg2[%c3, %c0_6, %c0_7] : memref<4x8x128xf32, #tpu.memory_space<vmem>>, vector<1x8x128xf32>
    %7 = vector.shape_cast %6 : vector<1x8x128xf32> to vector<8x128xf32>
    %c0_8 = arith.constant 0 : index
    %8 = memref.load %arg1[%c0_8] : memref<65xf32, #tpu.memory_space<smem>>
    %9 = vector.broadcast %8 : f32 to vector<8x128xf32>
    %10 = arith.mulf %1, %9 : vector<8x128xf32>
    %c1_9 = arith.constant 1 : index
    %11 = memref.load %arg1[%c1_9] : memref<65xf32, #tpu.memory_space<smem>>
    %12 = vector.broadcast %11 : f32 to vector<8x128xf32>
    %13 = arith.mulf %3, %12 : vector<8x128xf32>
    %14 = arith.addf %10, %13 : vector<8x128xf32>
    %c2_10 = arith.constant 2 : index
    %15 = memref.load %arg1[%c2_10] : memref<65xf32, #tpu.memory_space<smem>>
    %16 = vector.broadcast %15 : f32 to vector<8x128xf32>
    %17 = arith.mulf %5, %16 : vector<8x128xf32>
    %18 = arith.addf %14, %17 : vector<8x128xf32>
    %c3_11 = arith.constant 3 : index
    %19 = memref.load %arg1[%c3_11] : memref<65xf32, #tpu.memory_space<smem>>
    %20 = vector.broadcast %19 : f32 to vector<8x128xf32>
    %21 = arith.mulf %7, %20 : vector<8x128xf32>
    %22 = arith.addf %18, %21 : vector<8x128xf32>
    %c16 = arith.constant 16 : index
    %23 = memref.load %arg1[%c16] : memref<65xf32, #tpu.memory_space<smem>>
    %24 = vector.broadcast %23 : f32 to vector<8x128xf32>
    %25 = arith.addf %22, %24 : vector<8x128xf32>
    %26 = math.tanh %25 : vector<8x128xf32>
    %c4 = arith.constant 4 : index
    %27 = memref.load %arg1[%c4] : memref<65xf32, #tpu.memory_space<smem>>
    %28 = vector.broadcast %27 : f32 to vector<8x128xf32>
    %29 = arith.mulf %1, %28 : vector<8x128xf32>
    %c5 = arith.constant 5 : index
    %30 = memref.load %arg1[%c5] : memref<65xf32, #tpu.memory_space<smem>>
    %31 = vector.broadcast %30 : f32 to vector<8x128xf32>
    %32 = arith.mulf %3, %31 : vector<8x128xf32>
    %33 = arith.addf %29, %32 : vector<8x128xf32>
    %c6 = arith.constant 6 : index
    %34 = memref.load %arg1[%c6] : memref<65xf32, #tpu.memory_space<smem>>
    %35 = vector.broadcast %34 : f32 to vector<8x128xf32>
    %36 = arith.mulf %5, %35 : vector<8x128xf32>
    %37 = arith.addf %33, %36 : vector<8x128xf32>
    %c7 = arith.constant 7 : index
    %38 = memref.load %arg1[%c7] : memref<65xf32, #tpu.memory_space<smem>>
    %39 = vector.broadcast %38 : f32 to vector<8x128xf32>
    %40 = arith.mulf %7, %39 : vector<8x128xf32>
    %41 = arith.addf %37, %40 : vector<8x128xf32>
    %c17 = arith.constant 17 : index
    %42 = memref.load %arg1[%c17] : memref<65xf32, #tpu.memory_space<smem>>
    %43 = vector.broadcast %42 : f32 to vector<8x128xf32>
    %44 = arith.addf %41, %43 : vector<8x128xf32>
    %45 = math.tanh %44 : vector<8x128xf32>
    %c8 = arith.constant 8 : index
    %46 = memref.load %arg1[%c8] : memref<65xf32, #tpu.memory_space<smem>>
    %47 = vector.broadcast %46 : f32 to vector<8x128xf32>
    %48 = arith.mulf %1, %47 : vector<8x128xf32>
    %c9 = arith.constant 9 : index
    %49 = memref.load %arg1[%c9] : memref<65xf32, #tpu.memory_space<smem>>
    %50 = vector.broadcast %49 : f32 to vector<8x128xf32>
    %51 = arith.mulf %3, %50 : vector<8x128xf32>
    %52 = arith.addf %48, %51 : vector<8x128xf32>
    %c10 = arith.constant 10 : index
    %53 = memref.load %arg1[%c10] : memref<65xf32, #tpu.memory_space<smem>>
    %54 = vector.broadcast %53 : f32 to vector<8x128xf32>
    %55 = arith.mulf %5, %54 : vector<8x128xf32>
    %56 = arith.addf %52, %55 : vector<8x128xf32>
    %c11 = arith.constant 11 : index
    %57 = memref.load %arg1[%c11] : memref<65xf32, #tpu.memory_space<smem>>
    %58 = vector.broadcast %57 : f32 to vector<8x128xf32>
    %59 = arith.mulf %7, %58 : vector<8x128xf32>
    %60 = arith.addf %56, %59 : vector<8x128xf32>
    %c18 = arith.constant 18 : index
    %61 = memref.load %arg1[%c18] : memref<65xf32, #tpu.memory_space<smem>>
    %62 = vector.broadcast %61 : f32 to vector<8x128xf32>
    %63 = arith.addf %60, %62 : vector<8x128xf32>
    %64 = math.tanh %63 : vector<8x128xf32>
    %c12 = arith.constant 12 : index
    %65 = memref.load %arg1[%c12] : memref<65xf32, #tpu.memory_space<smem>>
    %66 = vector.broadcast %65 : f32 to vector<8x128xf32>
    %67 = arith.mulf %1, %66 : vector<8x128xf32>
    %c13 = arith.constant 13 : index
    %68 = memref.load %arg1[%c13] : memref<65xf32, #tpu.memory_space<smem>>
    %69 = vector.broadcast %68 : f32 to vector<8x128xf32>
    %70 = arith.mulf %3, %69 : vector<8x128xf32>
    %71 = arith.addf %67, %70 : vector<8x128xf32>
    %c14 = arith.constant 14 : index
    %72 = memref.load %arg1[%c14] : memref<65xf32, #tpu.memory_space<smem>>
    %73 = vector.broadcast %72 : f32 to vector<8x128xf32>
    %74 = arith.mulf %5, %73 : vector<8x128xf32>
    %75 = arith.addf %71, %74 : vector<8x128xf32>
    %c15 = arith.constant 15 : index
    %76 = memref.load %arg1[%c15] : memref<65xf32, #tpu.memory_space<smem>>
    %77 = vector.broadcast %76 : f32 to vector<8x128xf32>
    %78 = arith.mulf %7, %77 : vector<8x128xf32>
    %79 = arith.addf %75, %78 : vector<8x128xf32>
    %c19 = arith.constant 19 : index
    %80 = memref.load %arg1[%c19] : memref<65xf32, #tpu.memory_space<smem>>
    %81 = vector.broadcast %80 : f32 to vector<8x128xf32>
    %82 = arith.addf %79, %81 : vector<8x128xf32>
    %83 = math.tanh %82 : vector<8x128xf32>
    %c20 = arith.constant 20 : index
    %84 = memref.load %arg1[%c20] : memref<65xf32, #tpu.memory_space<smem>>
    %85 = vector.broadcast %84 : f32 to vector<8x128xf32>
    %86 = arith.mulf %26, %85 : vector<8x128xf32>
    %c21 = arith.constant 21 : index
    %87 = memref.load %arg1[%c21] : memref<65xf32, #tpu.memory_space<smem>>
    %88 = vector.broadcast %87 : f32 to vector<8x128xf32>
    %89 = arith.mulf %45, %88 : vector<8x128xf32>
    %90 = arith.addf %86, %89 : vector<8x128xf32>
    %c22 = arith.constant 22 : index
    %91 = memref.load %arg1[%c22] : memref<65xf32, #tpu.memory_space<smem>>
    %92 = vector.broadcast %91 : f32 to vector<8x128xf32>
    %93 = arith.mulf %64, %92 : vector<8x128xf32>
    %94 = arith.addf %90, %93 : vector<8x128xf32>
    %c23 = arith.constant 23 : index
    %95 = memref.load %arg1[%c23] : memref<65xf32, #tpu.memory_space<smem>>
    %96 = vector.broadcast %95 : f32 to vector<8x128xf32>
    %97 = arith.mulf %83, %96 : vector<8x128xf32>
    %98 = arith.addf %94, %97 : vector<8x128xf32>
    %c36 = arith.constant 36 : index
    %99 = memref.load %arg1[%c36] : memref<65xf32, #tpu.memory_space<smem>>
    %100 = vector.broadcast %99 : f32 to vector<8x128xf32>
    %101 = arith.addf %98, %100 : vector<8x128xf32>
    %102 = math.tanh %101 : vector<8x128xf32>
    %c24 = arith.constant 24 : index
    %103 = memref.load %arg1[%c24] : memref<65xf32, #tpu.memory_space<smem>>
    %104 = vector.broadcast %103 : f32 to vector<8x128xf32>
    %105 = arith.mulf %26, %104 : vector<8x128xf32>
    %c25 = arith.constant 25 : index
    %106 = memref.load %arg1[%c25] : memref<65xf32, #tpu.memory_space<smem>>
    %107 = vector.broadcast %106 : f32 to vector<8x128xf32>
    %108 = arith.mulf %45, %107 : vector<8x128xf32>
    %109 = arith.addf %105, %108 : vector<8x128xf32>
    %c26 = arith.constant 26 : index
    %110 = memref.load %arg1[%c26] : memref<65xf32, #tpu.memory_space<smem>>
    %111 = vector.broadcast %110 : f32 to vector<8x128xf32>
    %112 = arith.mulf %64, %111 : vector<8x128xf32>
    %113 = arith.addf %109, %112 : vector<8x128xf32>
    %c27 = arith.constant 27 : index
    %114 = memref.load %arg1[%c27] : memref<65xf32, #tpu.memory_space<smem>>
    %115 = vector.broadcast %114 : f32 to vector<8x128xf32>
    %116 = arith.mulf %83, %115 : vector<8x128xf32>
    %117 = arith.addf %113, %116 : vector<8x128xf32>
    %c37 = arith.constant 37 : index
    %118 = memref.load %arg1[%c37] : memref<65xf32, #tpu.memory_space<smem>>
    %119 = vector.broadcast %118 : f32 to vector<8x128xf32>
    %120 = arith.addf %117, %119 : vector<8x128xf32>
    %121 = math.tanh %120 : vector<8x128xf32>
    %c28 = arith.constant 28 : index
    %122 = memref.load %arg1[%c28] : memref<65xf32, #tpu.memory_space<smem>>
    %123 = vector.broadcast %122 : f32 to vector<8x128xf32>
    %124 = arith.mulf %26, %123 : vector<8x128xf32>
    %c29 = arith.constant 29 : index
    %125 = memref.load %arg1[%c29] : memref<65xf32, #tpu.memory_space<smem>>
    %126 = vector.broadcast %125 : f32 to vector<8x128xf32>
    %127 = arith.mulf %45, %126 : vector<8x128xf32>
    %128 = arith.addf %124, %127 : vector<8x128xf32>
    %c30 = arith.constant 30 : index
    %129 = memref.load %arg1[%c30] : memref<65xf32, #tpu.memory_space<smem>>
    %130 = vector.broadcast %129 : f32 to vector<8x128xf32>
    %131 = arith.mulf %64, %130 : vector<8x128xf32>
    %132 = arith.addf %128, %131 : vector<8x128xf32>
    %c31 = arith.constant 31 : index
    %133 = memref.load %arg1[%c31] : memref<65xf32, #tpu.memory_space<smem>>
    %134 = vector.broadcast %133 : f32 to vector<8x128xf32>
    %135 = arith.mulf %83, %134 : vector<8x128xf32>
    %136 = arith.addf %132, %135 : vector<8x128xf32>
    %c38 = arith.constant 38 : index
    %137 = memref.load %arg1[%c38] : memref<65xf32, #tpu.memory_space<smem>>
    %138 = vector.broadcast %137 : f32 to vector<8x128xf32>
    %139 = arith.addf %136, %138 : vector<8x128xf32>
    %140 = math.tanh %139 : vector<8x128xf32>
    %c32 = arith.constant 32 : index
    %141 = memref.load %arg1[%c32] : memref<65xf32, #tpu.memory_space<smem>>
    %142 = vector.broadcast %141 : f32 to vector<8x128xf32>
    %143 = arith.mulf %26, %142 : vector<8x128xf32>
    %c33 = arith.constant 33 : index
    %144 = memref.load %arg1[%c33] : memref<65xf32, #tpu.memory_space<smem>>
    %145 = vector.broadcast %144 : f32 to vector<8x128xf32>
    %146 = arith.mulf %45, %145 : vector<8x128xf32>
    %147 = arith.addf %143, %146 : vector<8x128xf32>
    %c34 = arith.constant 34 : index
    %148 = memref.load %arg1[%c34] : memref<65xf32, #tpu.memory_space<smem>>
    %149 = vector.broadcast %148 : f32 to vector<8x128xf32>
    %150 = arith.mulf %64, %149 : vector<8x128xf32>
    %151 = arith.addf %147, %150 : vector<8x128xf32>
    %c35 = arith.constant 35 : index
    %152 = memref.load %arg1[%c35] : memref<65xf32, #tpu.memory_space<smem>>
    %153 = vector.broadcast %152 : f32 to vector<8x128xf32>
    %154 = arith.mulf %83, %153 : vector<8x128xf32>
    %155 = arith.addf %151, %154 : vector<8x128xf32>
    %c39 = arith.constant 39 : index
    %156 = memref.load %arg1[%c39] : memref<65xf32, #tpu.memory_space<smem>>
    %157 = vector.broadcast %156 : f32 to vector<8x128xf32>
    %158 = arith.addf %155, %157 : vector<8x128xf32>
    %159 = math.tanh %158 : vector<8x128xf32>
    %c40 = arith.constant 40 : index
    %160 = memref.load %arg1[%c40] : memref<65xf32, #tpu.memory_space<smem>>
    %161 = vector.broadcast %160 : f32 to vector<8x128xf32>
    %162 = arith.mulf %102, %161 : vector<8x128xf32>
    %c41 = arith.constant 41 : index
    %163 = memref.load %arg1[%c41] : memref<65xf32, #tpu.memory_space<smem>>
    %164 = vector.broadcast %163 : f32 to vector<8x128xf32>
    %165 = arith.mulf %121, %164 : vector<8x128xf32>
    %166 = arith.addf %162, %165 : vector<8x128xf32>
    %c42 = arith.constant 42 : index
    %167 = memref.load %arg1[%c42] : memref<65xf32, #tpu.memory_space<smem>>
    %168 = vector.broadcast %167 : f32 to vector<8x128xf32>
    %169 = arith.mulf %140, %168 : vector<8x128xf32>
    %170 = arith.addf %166, %169 : vector<8x128xf32>
    %c43 = arith.constant 43 : index
    %171 = memref.load %arg1[%c43] : memref<65xf32, #tpu.memory_space<smem>>
    %172 = vector.broadcast %171 : f32 to vector<8x128xf32>
    %173 = arith.mulf %159, %172 : vector<8x128xf32>
    %174 = arith.addf %170, %173 : vector<8x128xf32>
    %c56 = arith.constant 56 : index
    %175 = memref.load %arg1[%c56] : memref<65xf32, #tpu.memory_space<smem>>
    %176 = vector.broadcast %175 : f32 to vector<8x128xf32>
    %177 = arith.addf %174, %176 : vector<8x128xf32>
    %178 = math.tanh %177 : vector<8x128xf32>
    %c44 = arith.constant 44 : index
    %179 = memref.load %arg1[%c44] : memref<65xf32, #tpu.memory_space<smem>>
    %180 = vector.broadcast %179 : f32 to vector<8x128xf32>
    %181 = arith.mulf %102, %180 : vector<8x128xf32>
    %c45 = arith.constant 45 : index
    %182 = memref.load %arg1[%c45] : memref<65xf32, #tpu.memory_space<smem>>
    %183 = vector.broadcast %182 : f32 to vector<8x128xf32>
    %184 = arith.mulf %121, %183 : vector<8x128xf32>
    %185 = arith.addf %181, %184 : vector<8x128xf32>
    %c46 = arith.constant 46 : index
    %186 = memref.load %arg1[%c46] : memref<65xf32, #tpu.memory_space<smem>>
    %187 = vector.broadcast %186 : f32 to vector<8x128xf32>
    %188 = arith.mulf %140, %187 : vector<8x128xf32>
    %189 = arith.addf %185, %188 : vector<8x128xf32>
    %c47 = arith.constant 47 : index
    %190 = memref.load %arg1[%c47] : memref<65xf32, #tpu.memory_space<smem>>
    %191 = vector.broadcast %190 : f32 to vector<8x128xf32>
    %192 = arith.mulf %159, %191 : vector<8x128xf32>
    %193 = arith.addf %189, %192 : vector<8x128xf32>
    %c57 = arith.constant 57 : index
    %194 = memref.load %arg1[%c57] : memref<65xf32, #tpu.memory_space<smem>>
    %195 = vector.broadcast %194 : f32 to vector<8x128xf32>
    %196 = arith.addf %193, %195 : vector<8x128xf32>
    %197 = math.tanh %196 : vector<8x128xf32>
    %c48 = arith.constant 48 : index
    %198 = memref.load %arg1[%c48] : memref<65xf32, #tpu.memory_space<smem>>
    %199 = vector.broadcast %198 : f32 to vector<8x128xf32>
    %200 = arith.mulf %102, %199 : vector<8x128xf32>
    %c49 = arith.constant 49 : index
    %201 = memref.load %arg1[%c49] : memref<65xf32, #tpu.memory_space<smem>>
    %202 = vector.broadcast %201 : f32 to vector<8x128xf32>
    %203 = arith.mulf %121, %202 : vector<8x128xf32>
    %204 = arith.addf %200, %203 : vector<8x128xf32>
    %c50 = arith.constant 50 : index
    %205 = memref.load %arg1[%c50] : memref<65xf32, #tpu.memory_space<smem>>
    %206 = vector.broadcast %205 : f32 to vector<8x128xf32>
    %207 = arith.mulf %140, %206 : vector<8x128xf32>
    %208 = arith.addf %204, %207 : vector<8x128xf32>
    %c51 = arith.constant 51 : index
    %209 = memref.load %arg1[%c51] : memref<65xf32, #tpu.memory_space<smem>>
    %210 = vector.broadcast %209 : f32 to vector<8x128xf32>
    %211 = arith.mulf %159, %210 : vector<8x128xf32>
    %212 = arith.addf %208, %211 : vector<8x128xf32>
    %c58 = arith.constant 58 : index
    %213 = memref.load %arg1[%c58] : memref<65xf32, #tpu.memory_space<smem>>
    %214 = vector.broadcast %213 : f32 to vector<8x128xf32>
    %215 = arith.addf %212, %214 : vector<8x128xf32>
    %216 = math.tanh %215 : vector<8x128xf32>
    %c52 = arith.constant 52 : index
    %217 = memref.load %arg1[%c52] : memref<65xf32, #tpu.memory_space<smem>>
    %218 = vector.broadcast %217 : f32 to vector<8x128xf32>
    %219 = arith.mulf %102, %218 : vector<8x128xf32>
    %c53 = arith.constant 53 : index
    %220 = memref.load %arg1[%c53] : memref<65xf32, #tpu.memory_space<smem>>
    %221 = vector.broadcast %220 : f32 to vector<8x128xf32>
    %222 = arith.mulf %121, %221 : vector<8x128xf32>
    %223 = arith.addf %219, %222 : vector<8x128xf32>
    %c54 = arith.constant 54 : index
    %224 = memref.load %arg1[%c54] : memref<65xf32, #tpu.memory_space<smem>>
    %225 = vector.broadcast %224 : f32 to vector<8x128xf32>
    %226 = arith.mulf %140, %225 : vector<8x128xf32>
    %227 = arith.addf %223, %226 : vector<8x128xf32>
    %c55 = arith.constant 55 : index
    %228 = memref.load %arg1[%c55] : memref<65xf32, #tpu.memory_space<smem>>
    %229 = vector.broadcast %228 : f32 to vector<8x128xf32>
    %230 = arith.mulf %159, %229 : vector<8x128xf32>
    %231 = arith.addf %227, %230 : vector<8x128xf32>
    %c59 = arith.constant 59 : index
    %232 = memref.load %arg1[%c59] : memref<65xf32, #tpu.memory_space<smem>>
    %233 = vector.broadcast %232 : f32 to vector<8x128xf32>
    %234 = arith.addf %231, %233 : vector<8x128xf32>
    %235 = math.tanh %234 : vector<8x128xf32>
    %c60 = arith.constant 60 : index
    %236 = memref.load %arg1[%c60] : memref<65xf32, #tpu.memory_space<smem>>
    %237 = vector.broadcast %236 : f32 to vector<8x128xf32>
    %238 = arith.mulf %178, %237 : vector<8x128xf32>
    %c61 = arith.constant 61 : index
    %239 = memref.load %arg1[%c61] : memref<65xf32, #tpu.memory_space<smem>>
    %240 = vector.broadcast %239 : f32 to vector<8x128xf32>
    %241 = arith.mulf %197, %240 : vector<8x128xf32>
    %242 = arith.addf %238, %241 : vector<8x128xf32>
    %c62 = arith.constant 62 : index
    %243 = memref.load %arg1[%c62] : memref<65xf32, #tpu.memory_space<smem>>
    %244 = vector.broadcast %243 : f32 to vector<8x128xf32>
    %245 = arith.mulf %216, %244 : vector<8x128xf32>
    %246 = arith.addf %242, %245 : vector<8x128xf32>
    %c63 = arith.constant 63 : index
    %247 = memref.load %arg1[%c63] : memref<65xf32, #tpu.memory_space<smem>>
    %248 = vector.broadcast %247 : f32 to vector<8x128xf32>
    %249 = arith.mulf %235, %248 : vector<8x128xf32>
    %250 = arith.addf %246, %249 : vector<8x128xf32>
    %c64 = arith.constant 64 : index
    %251 = memref.load %arg1[%c64] : memref<65xf32, #tpu.memory_space<smem>>
    %252 = vector.broadcast %251 : f32 to vector<8x128xf32>
    %253 = arith.addf %250, %252 : vector<8x128xf32>
    %254 = math.tanh %253 : vector<8x128xf32>
    %cst = arith.constant 1.000000e+00 : f32
    %255 = vector.broadcast %cst : f32 to vector<8x128xf32>
    %256 = arith.addf %254, %255 : vector<8x128xf32>
    %cst_12 = arith.constant 5.000000e-01 : f32
    %257 = vector.broadcast %cst_12 : f32 to vector<8x128xf32>
    %258 = arith.mulf %257, %256 : vector<8x128xf32>
    %c0_13 = arith.constant 0 : index
    %c0_14 = arith.constant 0 : index
    %c0_15 = arith.constant 0 : index
    %259 = vector.load %arg3[%c0_13, %c0_14, %c0_15] : memref<1x8x128xf32, #tpu.memory_space<vmem>>, vector<1x8x128xf32>
    %260 = vector.shape_cast %259 : vector<1x8x128xf32> to vector<8x128xf32>
    %261 = vector.shape_cast %258 : vector<8x128xf32> to vector<1x8x128xf32>
    tpu.vector_store %arg3[%c0_13, %c0_14, %c0_15], %261 {strides = array<i32>} : memref<1x8x128xf32, #tpu.memory_space<vmem>>, vector<1x8x128xf32>,
    return
  }
  func.func @transform_0(%arg0: i32) -> i32 {
    %c0_i32 = arith.constant 0 : i32
    %c0_i32_0 = arith.constant 0 : i32
    return %c0_i32 : i32
  }
  func.func @transform_1(%arg0: i32) -> (i32, i32, i32) {
    %c0_i32 = arith.constant 0 : i32
    %c0_i32_0 = arith.constant 0 : i32
    %c0_i32_1 = arith.constant 0 : i32
    return %c0_i32, %arg0, %c0_i32_0 : i32, i32, i32
  }
  func.func @transform_2(%arg0: i32) -> (i32, i32, i32) {
    %c0_i32 = arith.constant 0 : i32
    %c0_i32_0 = arith.constant 0 : i32
    %c0_i32_1 = arith.constant 0 : i32
    return %c0_i32, %arg0, %c0_i32_0 : i32, i32, i32
  }
}

</mosaic_0001>

<bundles_post_ra>
// kernel: tpu_custom_call.1
= control target key start
LH: loop header
LB: loop body
LE: loop exit
PB: predicated region body
PF: predicated region fallthrough
CT: control target
= control target key end

     0   :  { %7 = vsyncpa [#allocation5], 0  ;;  %s1074_s0 = inlined_call_operand.hbm [shape: f32[65], index: 0, kind: input, shape index: {}]   ;;  %s1075_s1 = inlined_call_operand.hbm [shape: f32[4,16,128], index: 1, kind: input, shape index: {}]   ;;  %s1076_s2 = inlined_call_operand.hbm [shape: f32[1,16,128], index: 2, kind: output, shape index: {}]  }
   0x1   :  { %8 = vsyncpa [#allocation3], 0 }
   0x2   :  { %10 = vsyncpa [#allocation3 + $0x1], 0 }
   0x3   :  { %11 = vsyncpa [#allocation4], 0 }
   0x4   :  { %13 = vsyncpa [#allocation4 + $0x1], 0  ;;  %s835_s9 = smov 0   ;;  %s837_s10 = smov 0  }
   0x5   :  { %s839_s11 = smov 0   ;;  %s841_s12 = smov 0  }
   0x6 LB: > { %s856_s13 = sadd.s32 4294967295, %s814_s12   ;;  %s532_s14 = sadd.s32 4294967294, %s814_s12   ;;  %s814_s12 = sphi %s841_s12, %s1087_s12   ;;  %s810_s11 = sphi %s839_s11, %s1086_s11   ;;  %s806_s10 = sphi %s837_s10, %s1085_s10   ;;  %s802_s9 = sphi %s835_s9, %s1084_s9  }
   0x7   : > { %s860_s15 = sadd.s32 1, %s814_s12   ;;  %s47_s16 = sadd.s32 1, %s810_s11 }
   0x8   : > { %s44_s17 = ssub.s32 %s814_s12, %s860_s15  ;;  %p54_p0 = scmp.ne.s32.totalorder %s810_s11, %s806_s10 }
   0x9   : > { %p45_p1 = scmp.eq.s32.totalorder %s44_s17, 0  ;;  %p55_p2 = scmp.eq.s32.totalorder %s814_s12, 0 }
   0xa   : > { %p60_p3 = scmp.ne.s32.totalorder %s806_s10, %s802_s9  ;;  %p61_p4 = scmp.eq.s32.totalorder %s856_s13, 0 }
   0xb   : > { %s872_s18 = scalar_select %p45_p1, %s810_s11, %s47_s16  }
   0xc   : > { %p874_p5 = por %p55_p2, %p54_p0  ;;  %p880_p6 = por %p61_p4, %p60_p3 }
   0xd   : > { %p84_p7 = scmp.eq.s32.totalorder %s856_s13, 1  ;;  %p90_p8 = scmp.eq.s32.totalorder %s532_s14, 1 }
   0xe   : > { %p533_p9 = scmp.ge.s32.totalorder %s814_s12, 1  ;;  %p97_p10 = scmp.lt.s32.totalorder %s814_s12, 3 }
   0xf   : > { %p887_p11 = por %p84_p7, %p54_p0  ;;  %p891_p12 = por %p90_p8, %p60_p3 }
  0x10   : > { %p895_p13 = pnand %p533_p9, %p97_p10  ;;  %s109_s26 = sshll.u32 %s1074_s0, 4  ;;  %s110_s26 = int_to_ptr.hbm [resolvable:$true] %s109_s26 }
  0x11   : > { %p634_p2 = scmp.lt.s32.totalorder %s814_s12, 2  ;;  %s120_s27 = sand.u32 1, %s810_s11  }
  0x12   : > { %p621_p1 = pneg %p895_p13  ;;  %s536_s29 = sshll.u32 %s120_s27, 5 }
  0x13   : > { %p911_p3 = pnand %p634_p2, %p874_p5  ;;  %s816_s30 = smov [#allocation2]  }
  0x14   : > { %p622_p7 = pnand %p621_p1, %p61_p4  ;;  %s537_s3 = sshll.u32 %s814_s12, 3 }
  0x15   : > { %s124_s4 = scalar_lea.vmem [#allocation6], %s536_s29  ;;  %s128_s8 = scalar_lea.hbm %s1075_s1, %s537_s3 }
  0x16   : > { %624 = dma.hbm_to_smem (!%p622_p7), %s110_s26, 16, %s816_s30, [#allocation5]  }
  0x17   : > { %s131_s5 = sshll.u32 %s124_s4, 4  ;;  %s129_s14 = sshll.u32 %s128_s8, 4  ;;  %s132_s5 = int_to_ptr.vmem [resolvable:$true] %s131_s5  ;;  %s130_s14 = int_to_ptr.hbm [resolvable:$true] %s129_s14 }
  0x18   : > { %s121_s16 = scalar_lea.sflag [#allocation3], %s120_s27  ;;  %s714_s17 = sshra.s32 %s130_s14, 4  ;;  %s715_s17 = int_to_ptr.hbm [resolvable:$true] %s714_s17 }
  0x19   : > { %s716_s19 = scalar_lea.hbm %s715_s17, 32  ;;  %p718_p8 = pneg %p911_p3 }
  0x1a   : > { %p717_p5 = scmp.ne.s32.totalorder %s715_s17, %s716_s19  ;;  %s721_s26 = scalar_lea.hbm %s1075_s1, 64 }
  0x1b   : > { %p722_p1 = scmp.lt.s32.totalorder %s715_s17, %s1075_s1  ;;  %p723_p2 = scmp.lt.s32.totalorder %s721_s26, %s716_s19 }
  0x1c   : > { %p719_p9 = pnand %p718_p8, %p717_p5 }
  0x1d   : > { %p724_p7 = por %p723_p2, %p722_p1 }
  0x1e   : > { %p720_p10 = pneg %p719_p9 }
  0x20   : > { %p725_p0 = pnand %p724_p7, %p720_p10 }
  0x22   : > { %728 = shalt.err (!%p725_p0)
}
  0x23   : > { %s817_s27 = smov 256   ;;  %s818_s3 = smov 128  }
  0x24   : > { %s819_s4 = smov 8   ;;  %143 = sbr.rel (%p895_p13) target bundleno = 148 (0x94), region = 28 }
  0x25   : > { %628 = dma.hbm_to_vmem [thread:$0]  (!%p911_p3), %s130_s14, 512, %s132_s5, %s121_s16, %s817_s27, %s818_s3, %s819_s4  }
  0x29   : > { %789 = dma.done.wait (%p61_p4), [#allocation5], 16  }
  0x2a   : > { %791 = vsyncadd (%p61_p4), [#allocation5], 4294967280  ;;  %s936_s6 = sand.u32 1, %s806_s10  }
  0x2b   : > { %s540_s7 = sshll.u32 %s936_s6, 5  ;;  %s151_s8 = scalar_lea.sflag [#allocation3], %s936_s6 }
  0x2c   : > { %s154_s17 = scalar_lea.vmem [#allocation6], %s540_s7 }
  0x2d   : > { %793 = dma.done.wait (%p880_p6), %s151_s8, 512  }
  0x2e   : > { %795 = vsyncadd (%p880_p6), %s151_s8, 4294966784 }
  0x2f   : > { %160 = sfence }
  0x30   : > { %s184_s23 = sld [smem:[#allocation2]]  ;;  %v177_v0 = vld [vmem:[%s154_s17] sm:$0xff]  ;;  %v946_v1 = vld [vmem:[%s154_s17 + $0x8] sm:$0xff]  ;;  %v948_v2 = vld [vmem:[%s154_s17 + $0x10] sm:$0xff] }
  0x31   : > { %s545_s28 = sld [smem:[#allocation2 + $0x1]]  ;;  %v950_v4 = vld [vmem:[%s154_s17 + $0x18] sm:$0xff] }
  0x32   : > { %s546_s5 = sld [smem:[#allocation2 + $0x2]] }
  0x33   : > { %s547_s14 = sld [smem:[#allocation2 + $0x3]] }
  0x34   : > { %s944_s16 = sld [smem:[#allocation2 + $0x10]] }
  0x35   : > { %s549_s19 = sld [smem:[#allocation2 + $0x4]] }
  0x36   : > { %v185_v3 = vstv %s184_s23  ;;  %s550_s24 = sld [smem:[#allocation2 + $0x5]] }
  0x37   : > { %v186_v5 = vmul.f32 %v185_v3, %v177_v0  ;;  %v188_v6 = vstv %s545_s28  ;;  %s551_s20 = sld [smem:[#allocation2 + $0x6]] }
  0x38   : > { %v189_v7 = vmul.f32 %v946_v1, %v188_v6  ;;  %v192_v8 = vstv %s546_s5  ;;  %s552_s25 = sld [smem:[#allocation2 + $0x7]] }
  0x39   : > { %v193_v9 = vmul.f32 %v948_v2, %v192_v8  ;;  %v196_v10 = vstv %s547_s14  ;;  %s954_s26 = sld [smem:[#allocation2 + $0x11]] }
  0x3a   : > { %v190_v11 = vadd.f32 %v189_v7, %v186_v5  ;;  %v197_v12 = vmul.f32 %v950_v4, %v196_v10  ;;  %s554_s29 = sld [smem:[#allocation2 + $0x8]]  ;;  %v200_v20 = vstv %s944_s16 }
  0x3b   : > { %v204_v13 = vstv %s549_s19  ;;  %s555_s30 = sld [smem:[#allocation2 + $0x9]] }
  0x3c   : > { %v194_v14 = vadd.f32 %v193_v9, %v190_v11  ;;  %v205_v15 = vmul.f32 %v204_v13, %v177_v0  ;;  %v207_v16 = vstv %s550_s24  ;;  %s556_s27 = sld [smem:[#allocation2 + $0xa]] }
  0x3d   : > { %v208_v17 = vmul.f32 %v946_v1, %v207_v16  ;;  %v211_v18 = vstv %s551_s20  ;;  %s557_s3 = sld [smem:[#allocation2 + $0xb]] }
  0x3e   : > { %v198_v19 = vadd.f32 %v197_v12, %v194_v14  ;;  %v212_v21 = vmul.f32 %v948_v2, %v211_v18  ;;  %v215_v22 = vstv %s552_s25  ;;  %s960_s4 = sld [smem:[#allocation2 + $0x12]] }
  0x3f   : > { %v209_v23 = vadd.f32 %v208_v17, %v205_v15  ;;  %v216_v24 = vmul.f32 %v950_v4, %v215_v22  ;;  %s559_s7 = sld [smem:[#allocation2 + $0xc]]  ;;  %v219_v30 = vstv %s954_s26 }
  0x40   : > { %v223_v25 = vstv %s554_s29  ;;  %s560_s8 = sld [smem:[#allocation2 + $0xd]]  ;;  %v201_v26 = vadd.f32 %v200_v20, %v198_v19 }
  0x41   : > { %v213_v27 = vadd.f32 %v212_v21, %v209_v23  ;;  %v224_v28 = vmul.f32 %v223_v25, %v177_v0  ;;  %v226_v29 = vstv %s555_s30  ;;  %s561_s17 = sld [smem:[#allocation2 + $0xe]] }
  0x42   : > { %v227_v31 = vmul.f32 %v946_v1, %v226_v29  ;;  %v230_v32 = vstv %s556_s27  ;;  %s562_s23 = sld [smem:[#allocation2 + $0xf]]  ;;  %673 = vtanh.f32 %v201_v26 }
  0x43   : > { %v217_v33 = vadd.f32 %v216_v24, %v213_v27  ;;  %v231_v34 = vmul.f32 %v948_v2, %v230_v32  ;;  %v234_v35 = vstv %s557_s3  ;;  %s966_s28 = sld [smem:[#allocation2 + $0x13]] }
  0x44   : > { %v228_v36 = vadd.f32 %v227_v31, %v224_v28  ;;  %v235_v37 = vmul.f32 %v950_v4, %v234_v35  ;;  %s969_s5 = sld [smem:[#allocation2 + $0x14]]  ;;  %v238_v43 = vstv %s960_s4 }
  0x45   : > { %v220_v38 = vadd.f32 %v219_v30, %v217_v33  ;;  %v242_v39 = vstv %s559_s7  ;;  %s971_s14 = sld [smem:[#allocation2 + $0x15]] }
  0x46   : > { %v232_v40 = vadd.f32 %v231_v34, %v228_v36  ;;  %v243_v41 = vmul.f32 %v242_v39, %v177_v0  ;;  %v245_v42 = vstv %s560_s8  ;;  %s973_s16 = sld [smem:[#allocation2 + $0x16]] }
  0x47   : > { %675 = vtanh.f32 %v220_v38  ;;  %v246_v44 = vmul.f32 %v946_v1, %v245_v42  ;;  %v249_v45 = vstv %s561_s17  ;;  %s977_s19 = sld [smem:[#allocation2 + $0x17]] }
  0x48   : > { %v236_v46 = vadd.f32 %v235_v37, %v232_v40  ;;  %v250_v47 = vmul.f32 %v948_v2, %v249_v45  ;;  %v253_v48 = vstv %s562_s23  ;;  %s980_s24 = sld [smem:[#allocation2 + $0x24]]  ;;  %v674_v52 = vpop.eup %673 }
  0x49   : > { %v247_v49 = vadd.f32 %v246_v44, %v243_v41  ;;  %v254_v50 = vmul.f32 %v950_v4, %v253_v48  ;;  %s569_s20 = sld [smem:[#allocation2 + $0x18]]  ;;  %v257_v56 = vstv %s966_s28 }
  0x4a   : > { %v239_v51 = vadd.f32 %v238_v43, %v236_v46  ;;  %s570_s25 = sld [smem:[#allocation2 + $0x19]]  ;;  %v261_v54 = vstv %s969_s5 }
  0x4b   : > { %v251_v53 = vadd.f32 %v250_v47, %v247_v49  ;;  %v264_v55 = vstv %s971_s14  ;;  %s571_s26 = sld [smem:[#allocation2 + $0x1a]]  ;;  %v262_v59 = vmul.f32 %v674_v52, %v261_v54 }
  0x4c   : > { %677 = vtanh.f32 %v239_v51  ;;  %s986_s29 = sld [smem:[#allocation2 + $0x1b]]  ;;  %v268_v63 = vstv %s973_s16 }
  0x4d   : > { %v676_v57 = vpop.eup %675  ;;  %v255_v58 = vadd.f32 %v254_v50, %v251_v53  ;;  %s988_s30 = sld [smem:[#allocation2 + $0x25]]  ;;  %v272_v10 = vstv %s977_s19 }
  0x4e   : > { %v265_v60 = vmul.f32 %v676_v57, %v264_v55  ;;  %s574_s27 = sld [smem:[#allocation2 + $0x1c]]  ;;  %v276_v25 = vstv %s980_s24 }
  0x4f   : > { %v258_v61 = vadd.f32 %v257_v56, %v255_v58  ;;  %v280_v62 = vstv %s569_s20  ;;  %s575_s3 = sld [smem:[#allocation2 + $0x1d]] }
  0x50   : > { %v281_v0 = vmul.f32 %v674_v52, %v280_v62  ;;  %v283_v1 = vstv %s570_s25  ;;  %s576_s4 = sld [smem:[#allocation2 + $0x1e]]  ;;  %v266_v5 = vadd.f32 %v265_v60, %v262_v59 }
  0x51   : > { %679 = vtanh.f32 %v258_v61  ;;  %v284_v2 = vmul.f32 %v676_v57, %v283_v1  ;;  %v287_v3 = vstv %s571_s26  ;;  %s577_s7 = sld [smem:[#allocation2 + $0x1f]] }
  0x52   : > { %v678_v4 = vpop.eup %677  ;;  %s991_s8 = sld [smem:[#allocation2 + $0x26]]  ;;  %v291_v11 = vstv %s986_s29 }
  0x53   : > { %v269_v6 = vmul.f32 %v678_v4, %v268_v63  ;;  %v285_v7 = vadd.f32 %v284_v2, %v281_v0  ;;  %v288_v8 = vmul.f32 %v678_v4, %v287_v3  ;;  %s579_s17 = sld [smem:[#allocation2 + $0x20]]  ;;  %v295_v26 = vstv %s988_s30 }
  0x54   : > { %v299_v9 = vstv %s574_s27  ;;  %s993_s23 = sld [smem:[#allocation2 + $0x21]] }
  0x55   : > { %v300_v12 = vmul.f32 %v674_v52, %v299_v9  ;;  %v302_v13 = vstv %s575_s3  ;;  %s997_s28 = sld [smem:[#allocation2 + $0x22]]  ;;  %v270_v14 = vadd.f32 %v269_v6, %v266_v5  ;;  %v289_v15 = vadd.f32 %v288_v8, %v285_v7 }
  0x56   : > { %v303_v16 = vmul.f32 %v676_v57, %v302_v13  ;;  %v306_v17 = vstv %s576_s4  ;;  %s999_s5 = sld [smem:[#allocation2 + $0x23]] }
  0x57   : > { %v680_v18 = vpop.eup %679  ;;  %v307_v19 = vmul.f32 %v678_v4, %v306_v17  ;;  %v310_v20 = vstv %s577_s7  ;;  %s1001_s14 = sld [smem:[#allocation2 + $0x27]] }
  0x58   : > { %v273_v21 = vmul.f32 %v680_v18, %v272_v10  ;;  %v292_v22 = vmul.f32 %v680_v18, %v291_v11  ;;  %v304_v23 = vadd.f32 %v303_v16, %v300_v12  ;;  %v311_v24 = vmul.f32 %v680_v18, %v310_v20  ;;  %s1003_s16 = sld [smem:[#allocation2 + $0x28]] }
  0x59   : > { %v318_v27 = vstv %s579_s17  ;;  %s1007_s19 = sld [smem:[#allocation2 + $0x29]]  ;;  %v314_v32 = vstv %s991_s8 }
  0x5a   : > { %v274_v28 = vadd.f32 %v273_v21, %v270_v14  ;;  %v293_v29 = vadd.f32 %v292_v22, %v289_v15  ;;  %v308_v30 = vadd.f32 %v307_v19, %v304_v23  ;;  %v319_v31 = vmul.f32 %v674_v52, %v318_v27  ;;  %s1009_s20 = sld [smem:[#allocation2 + $0x2a]] }
  0x5b   : > { %v321_v33 = vstv %s993_s23  ;;  %v325_v34 = vstv %s997_s28  ;;  %s1014_s25 = sld [smem:[#allocation2 + $0x2b]] }
  0x5c   : > { %v277_v35 = vadd.f32 %v276_v25, %v274_v28  ;;  %v296_v36 = vadd.f32 %v295_v26, %v293_v29  ;;  %v312_v37 = vadd.f32 %v311_v24, %v308_v30  ;;  %v322_v38 = vmul.f32 %v676_v57, %v321_v33  ;;  %s1016_s24 = sld [smem:[#allocation2 + $0x38]] }
  0x5d   : > { %v326_v39 = vmul.f32 %v678_v4, %v325_v34  ;;  %v329_v40 = vstv %s999_s5  ;;  %s589_s26 = sld [smem:[#allocation2 + $0x2c]]  ;;  %v333_v45 = vstv %s1001_s14 }
  0x5e   : > { %681 = vtanh.f32 %v277_v35  ;;  %v315_v41 = vadd.f32 %v314_v32, %v312_v37  ;;  %v323_v42 = vadd.f32 %v322_v38, %v319_v31  ;;  %v330_v43 = vmul.f32 %v680_v18, %v329_v40  ;;  %s590_s29 = sld [smem:[#allocation2 + $0x2d]] }
  0x5f   : > { %683 = vtanh.f32 %v296_v36  ;;  %s591_s30 = sld [smem:[#allocation2 + $0x2e]]  ;;  %v337_v47 = vstv %s1003_s16  ;;  %v340_v48 = vstv %s1007_s19 }
  0x60   : > { %685 = vtanh.f32 %v315_v41  ;;  %v327_v44 = vadd.f32 %v326_v39, %v323_v42  ;;  %s1019_s27 = sld [smem:[#allocation2 + $0x2f]]  ;;  %v344_v52 = vstv %s1009_s20 }
  0x61   : > { %s1022_s3 = sld [smem:[#allocation2 + $0x39]]  ;;  %v348_v4 = vstv %s1014_s25 }
  0x62   : > { %v331_v46 = vadd.f32 %v330_v43, %v327_v44  ;;  %s594_s4 = sld [smem:[#allocation2 + $0x30]]  ;;  %v352_v13 = vstv %s1016_s24 }
  0x63   : > { %v356_v49 = vstv %s589_s26  ;;  %s595_s7 = sld [smem:[#allocation2 + $0x31]] }
  0x64   : > { %v682_v50 = vpop.eup %681  ;;  %v334_v51 = vadd.f32 %v333_v45, %v331_v46  ;;  %v359_v53 = vstv %s590_s29  ;;  %s596_s8 = sld [smem:[#allocation2 + $0x32]] }
  0x65   : > { %v684_v54 = vpop.eup %683  ;;  %v338_v55 = vmul.f32 %v682_v50, %v337_v47  ;;  %v357_v56 = vmul.f32 %v682_v50, %v356_v49  ;;  %v363_v57 = vstv %s591_s30  ;;  %s1027_s17 = sld [smem:[#allocation2 + $0x33]]  ;;  %s541_s30 = sshll.u32 %s936_s6, 3 }
  0x66   : > { %v686_v58 = vpop.eup %685  ;;  %687 = vtanh.f32 %v334_v51  ;;  %v341_v59 = vmul.f32 %v684_v54, %v340_v48  ;;  %v360_v60 = vmul.f32 %v684_v54, %v359_v53  ;;  %s1029_s23 = sld [smem:[#allocation2 + $0x3a]]  ;;  %v367_v5 = vstv %s1019_s27  ;;  %s610_s27 = sshll.u32 %s856_s13, 3 }
  0x67   : > { %v345_v61 = vmul.f32 %v686_v58, %v344_v52  ;;  %v364_v62 = vmul.f32 %v686_v58, %v363_v57  ;;  %s599_s28 = sld [smem:[#allocation2 + $0x34]]  ;;  %v371_v14 = vstv %s1022_s3 }
  0x68   : > { %v342_v63 = vadd.f32 %v341_v59, %v338_v55  ;;  %v361_v0 = vadd.f32 %v360_v60, %v357_v56  ;;  %v375_v1 = vstv %s594_s4  ;;  %s600_s5 = sld [smem:[#allocation2 + $0x35]] }
  0x69   : > { %v376_v2 = vmul.f32 %v682_v50, %v375_v1  ;;  %v378_v3 = vstv %s595_s7  ;;  %s601_s14 = sld [smem:[#allocation2 + $0x36]]  ;;  %s445_s7 = scalar_lea.hbm %s1076_s2, %s610_s27 }
  0x6a   : > { %v379_v6 = vmul.f32 %v684_v54, %v378_v3  ;;  %v382_v7 = vstv %s596_s8  ;;  %s602_s16 = sld [smem:[#allocation2 + $0x37]]  ;;  %v346_v8 = vadd.f32 %v345_v61, %v342_v63  ;;  %v365_v9 = vadd.f32 %v364_v62, %v361_v0  ;;  %s176_s8 = scalar_lea.vmem [#allocation7], %s541_s30 }
  0x6b   : > { %v383_v10 = vmul.f32 %v686_v58, %v382_v7  ;;  %v386_v11 = vstv %s1027_s17  ;;  %s1036_s19 = sld [smem:[#allocation2 + $0x3b]]  ;;  %s447_s17 = sshll.u32 %s176_s8, 4  ;;  %s448_s17 = int_to_ptr.vmem [resolvable:$true] %s447_s17 }
  0x6c   : > { %v688_v12 = vpop.eup %687  ;;  %v380_v15 = vadd.f32 %v379_v6, %v376_v2  ;;  %v390_v21 = vstv %s1029_s23  ;;  %s604_s20 = sld [smem:[#allocation2 + $0x3c]]  ;;  %s449_s23 = sshll.u32 %s445_s7, 4  ;;  %s450_s23 = int_to_ptr.hbm [resolvable:$true] %s449_s23 }
  0x6d   : > { %v349_v16 = vmul.f32 %v688_v12, %v348_v4  ;;  %v368_v17 = vmul.f32 %v688_v12, %v367_v5  ;;  %v387_v18 = vmul.f32 %v688_v12, %v386_v11  ;;  %v394_v19 = vstv %s599_s28  ;;  %s605_s25 = sld [smem:[#allocation2 + $0x3d]]  ;;  %s435_s28 = scalar_lea.sflag [#allocation4], %s936_s6 }
  0x6e   : > { %v384_v20 = vadd.f32 %v383_v10, %v380_v15  ;;  %v395_v22 = vmul.f32 %v682_v50, %v394_v19  ;;  %v397_v23 = vstv %s600_s5  ;;  %s606_s24 = sld [smem:[#allocation2 + $0x3e]]  ;;  %s758_s5 = sshra.s32 %s450_s23, 4  ;;  %s759_s5 = int_to_ptr.hbm [resolvable:$true] %s758_s5 }
  0x6f   : > { %v350_v24 = vadd.f32 %v349_v16, %v346_v8  ;;  %v369_v25 = vadd.f32 %v368_v17, %v365_v9  ;;  %v398_v26 = vmul.f32 %v684_v54, %v397_v23  ;;  %v401_v27 = vstv %s601_s14  ;;  %s607_s26 = sld [smem:[#allocation2 + $0x3f]]  ;;  %s760_s14 = scalar_lea.hbm %s759_s5, 8 }
  0x70   : > { %v388_v28 = vadd.f32 %v387_v18, %v384_v20  ;;  %v402_v29 = vmul.f32 %v686_v58, %v401_v27  ;;  %v405_v30 = vstv %s602_s16  ;;  %s608_s29 = sld [smem:[#allocation2 + $0x40]]  ;;  %p761_p4 = scmp.ne.s32.totalorder %s759_s5, %s760_s14 }
  0x71   : > { %v353_v31 = vadd.f32 %v352_v13, %v350_v24  ;;  %v372_v32 = vadd.f32 %v371_v14, %v369_v25  ;;  %v399_v33 = vadd.f32 %v398_v26, %v395_v22  ;;  %v406_v34 = vmul.f32 %v688_v12, %v405_v30  ;;  %p765_p0 = scmp.lt.s32.totalorder %s759_s5, %s1076_s2 }
  0x72   : > { %v391_v35 = vadd.f32 %v390_v21, %v388_v28  ;;  %v409_v37 = vstv %s1036_s19  ;;  %v413_v40 = vstv %s604_s20  ;;  %p762_p6 = pnand %p761_p4, %p887_p11  ;;  %s764_s19 = scalar_lea.hbm %s1076_s2, 16 }
  0x73   : > { %689 = vtanh.f32 %v353_v31  ;;  %v403_v36 = vadd.f32 %v402_v29, %v399_v33  ;;  %v416_v41 = vstv %s605_s25  ;;  %p766_p3 = scmp.lt.s32.totalorder %s764_s19, %s760_s14 }
  0x74   : > { %691 = vtanh.f32 %v372_v32  ;;  %v420_v43 = vstv %s606_s24  ;;  %p763_p13 = pneg %p762_p6 }
  0x75   : > { %693 = vtanh.f32 %v391_v35  ;;  %v407_v38 = vadd.f32 %v406_v34, %v403_v36  ;;  %v424_v50 = vstv %s607_s26  ;;  %p767_p5 = por %p766_p3, %p765_p0 }
  0x76   : > { %v428_v54 = vstv %s608_s29 }
  0x77   : > { %v410_v39 = vadd.f32 %v409_v37, %v407_v38  ;;  %p768_p8 = pnand %p767_p5, %p763_p13 }
  0x79   : > { %v690_v42 = vpop.eup %689  ;;  %695 = vtanh.f32 %v410_v39 }
  0x7a   : > { %v692_v44 = vpop.eup %691  ;;  %v414_v45 = vmul.f32 %v690_v42, %v413_v40 }
  0x7b   : > { %v694_v46 = vpop.eup %693  ;;  %v417_v47 = vmul.f32 %v692_v44, %v416_v41 }
  0x7c   : > { %v421_v48 = vmul.f32 %v694_v46, %v420_v43 }
  0x7d   : > { %v418_v49 = vadd.f32 %v417_v47, %v414_v45 }
  0x7f   : > { %v696_v51 = vpop.eup %695  ;;  %v422_v52 = vadd.f32 %v421_v48, %v418_v49 }
  0x80   : > { %v425_v53 = vmul.f32 %v696_v51, %v424_v50 }
  0x82   : > { %v426_v55 = vadd.f32 %v425_v53, %v422_v52 }
  0x84   : > { %v429_v56 = vadd.f32 %v428_v54, %v426_v55 }
  0x86   : > { %697 = vtanh.f32 %v429_v56 }
  0x8c   : > { %v698_v57 = vpop.eup %697 }
  0x8d   : > { %v431_v58 = vadd.f32 1.0, %v698_v57 }
  0x8f   : > { %v432_v59 = vmul.f32 0.5, %v431_v58 }
  0x91   : > { %433 = vst [vmem:[%s176_s8] sm:$0xff] %v432_v59 }
  0x92   : > { %771 = shalt.err (!%p768_p8)
}
  0x93   : > { %619 = dma.vmem_to_hbm [thread:$0]  (%p887_p11), %s448_s17, 128, %s450_s23, %s435_s28  }
  0x94 PF: > { %s461_s6 = sand.u32 1, %s802_s9   ;;  %p1083_p9 = scmp.ge.s32.totalorder %s814_s12, 2 }
  0x95   : > { %s462_s24 = scalar_lea.sflag [#allocation4], %s461_s6 }
  0x96   : > { %p630_p10 = pnand %p1083_p9, %p891_p12 }
  0x98   : > { %p631_p1 = pneg %p630_p10 }
  0x9a   : > { %797 = dma.done.wait (%p631_p1), %s462_s24, 128  }
  0x9b   : > { %799 = vsyncadd (%p631_p1), %s462_s24, 4294967168  ;;  %p16_p2 = scmp.ge.s32.totalorder %s860_s15, 4   ;;  %s1084_s9 = smov %s806_s10 }
  0x9c   : > { %s1085_s10 = smov %s810_s11  ;;  %s1086_s11 = smov %s872_s18 }
  0x9d   : > { %s1087_s12 = smov %s860_s15  ;;  %18 = sbr.rel (!%p16_p2) target bundleno = 6 (0x6), region = 81 }
  0xa2   :  { %468 = vsyncpa [#allocation3], 1 }
  0xa3   :  { %470 = vsyncpa [#allocation3 + $0x1], 1 }
  0xa4   :  { %471 = vsyncpa [#allocation4], 1 }
  0xa5   :  { %473 = vsyncpa [#allocation4 + $0x1], 1 }
  0xa6   :  { %474 = vsyncpa [#allocation5], 1 }
  0xa7   :  { %476 = vsyncpa [#allocation5 + $0x1], 1 }

</bundles_post_ra>
